<compile_context>
chip_gen: v7x
topology: tpu7x:2x2x1
jax: 0.10.0
libtpu: 0.0.40
codegen_flags: <defaults>
</compile_context>

<pallas_src>
import jax
import jax.numpy as jnp
import numpy as np
from jax.experimental import pallas as pl
from jax.experimental.pallas import tpu as pltpu

BN_EPS = 1e-5


def _im2col(x, slab_ref):
    """x: (TH+2, W+2, Cin) bf16 value. Writes the 9 (3x3) taps into the shared
    (TH, W, 9*Cin) VMEM scratch; returns it as a (TH*W, 9*Cin) matmul slab."""
    thp2, wp2, cin = x.shape
    th_sz, w_sz = thp2 - 2, wp2 - 2
    for th in range(3):
        for tw in range(3):
            t = th * 3 + tw
            slab_ref[:, :, t * cin:(t + 1) * cin] = x[th:th + th_sz,
                                                      tw:tw + w_sz, :]
    return slab_ref[...].reshape(th_sz * w_sz, 9 * cin)


def _stats_kernel(x_ref, w_ref, stat_ref, slab_ref):
    """Pass 1: packed conv (all 4 branches in one matmul) + per-channel
    sum / sum-of-squares for training-mode BatchNorm statistics."""
    x = x_ref[0]                                   # (TH+2, W+2, Cin) bf16
    slab = _im2col(x, slab_ref)                    # (TH*W, 9*Cin)   bf16
    y = jnp.dot(slab, w_ref[...], preferred_element_type=jnp.float32)
    s = jnp.sum(y, axis=0, keepdims=True)          # (1, 4*Cout)
    ssq = jnp.sum(y * y, axis=0, keepdims=True)    # (1, 4*Cout)
    stat_ref[...] = jnp.concatenate([s, ssq], axis=0).reshape(stat_ref.shape)


def _conv_bn_relu_kernel(x_ref, w_ref, scale_ref, shift_ref, out_ref, slab_ref):
    """Pass 2: packed conv, precomputed BN affine (scale/shift already folds
    batch stats + gamma/beta), ReLU, lane-dense (TH, W, 4*Cout) store."""
    _, th_sz, w_sz, c4 = out_ref.shape
    x = x_ref[0]
    slab = _im2col(x, slab_ref)
    y = jnp.dot(slab, w_ref[...], preferred_element_type=jnp.float32)
    y = jnp.maximum(y * scale_ref[...] + shift_ref[...], 0.0)
    out_ref[...] = y.reshape(1, th_sz, w_sz, c4)


def fast_upconv_block(x_nchw, w1, w2, w3, w4, gamma, beta, *, row_tile=None):
    """x_nchw: (N, Cin, H, W) f32; w_k: PyTorch OIHW; gamma/beta: (4, Cout)."""
    N, Cin, H, W = x_nchw.shape
    Cout = w1.shape[0]
    C4 = 4 * Cout

    if row_tile is None:
        # Largest divisor of H that keeps the per-tile matmul M (=row_tile*W)
        # and VMEM footprint modest.  TODO(synk): per-chip (v5e/v6e/v7x) tuning.
        row_tile = 1
        for t in range(H, 0, -1):
            if H % t == 0 and t * W <= 4096:
                row_tile = t
                break
    TH = row_tile
    assert H % TH == 0, (H, TH)
    T = H // TH

    # ---- input prep: NHWC, pad-by-1 slab, overlapping (halo) row windows ----
    x_nhwc = jnp.transpose(x_nchw, (0, 2, 3, 1)).astype(jnp.float32)
    x_big = jnp.pad(x_nhwc, ((0, 0), (1, 1), (1, 1), (0, 0)))
    x_win = jnp.stack([x_big[:, t * TH:t * TH + TH + 2] for t in range(T)],
                      axis=1)
    x_win = x_win.reshape(N * T, TH + 2, W + 2, Cin).astype(jnp.bfloat16)

    # ---- packed weights: 3x3 tap grid x Cin -> 4*Cout (branch on lanes) ----
    # Column blocks ordered by (row parity a, col parity b):
    #   (0,0)=conv1  (0,1)=conv3  (1,0)=conv2  (1,1)=conv4
    # Smaller kernels are zero-padded into the 3x3 grid at the offsets implied
    # by their F.pad patterns.
    def oihw_to_hwio(w):
        return jnp.transpose(w, (2, 3, 1, 0)).astype(jnp.float32)

    wp = jnp.zeros((3, 3, Cin, C4), jnp.float32)
    wp = wp.at[:, :, :, 0 * Cout:1 * Cout].set(oihw_to_hwio(w1))   # (0,0)
    wp = wp.at[:, 1:, :, 1 * Cout:2 * Cout].set(oihw_to_hwio(w3))  # (0,1)
    wp = wp.at[1:, :, :, 2 * Cout:3 * Cout].set(oihw_to_hwio(w2))  # (1,0)
    wp = wp.at[1:, 1:, :, 3 * Cout:4 * Cout].set(oihw_to_hwio(w4))  # (1,1)
    wp = wp.reshape(9 * Cin, C4).astype(jnp.bfloat16)

    branch_order = jnp.array([0, 2, 1, 3])   # branch index per column block
    gamma_p = gamma.astype(jnp.float32)[branch_order].reshape(C4)
    beta_p = beta.astype(jnp.float32)[branch_order].reshape(C4)

    # ---- common specs ----
    x_spec = pl.BlockSpec((1, TH + 2, W + 2, Cin),
                          lambda n, t: (n * T + t, 0, 0, 0))
    w_spec = pl.BlockSpec((9 * Cin, C4), lambda n, t: (0, 0))
    vec_spec = pl.BlockSpec((1, C4), lambda n, t: (0, 0))
    slab_scratch = pltpu.VMEM((TH, W, 9 * Cin), jnp.bfloat16)
    cparams = pltpu.CompilerParams(
        dimension_semantics=("parallel", "parallel"))

    # ---- pass 1: per-tile sum / sumsq of the packed conv output ----
    partial = pl.pallas_call(
        _stats_kernel,
        out_shape=jax.ShapeDtypeStruct((N, T, 2, C4), jnp.float32),
        grid=(N, T),
        in_specs=[x_spec, w_spec],
        out_specs=pl.BlockSpec((1, 1, 2, C4), lambda n, t: (n, t, 0, 0)),
        scratch_shapes=[slab_scratch],
        compiler_params=cparams,
    )(x_win, wp)

    # ---- fold global batch stats + gamma/beta into a single scale/shift ----
    cnt = float(N * H * W)
    sums = jnp.sum(partial, axis=(0, 1))             # (2, C4)
    mean = sums[0] / cnt
    var = sums[1] / cnt - mean * mean                # biased var (training BN)
    inv = gamma_p * jax.lax.rsqrt(var + BN_EPS)
    scale = inv.reshape(1, C4)
    shift = (beta_p - mean * inv).reshape(1, C4)

    # ---- pass 2: conv + BN affine + ReLU, lane-dense (N, H, W, 4*Cout) ----
    out = pl.pallas_call(
        _conv_bn_relu_kernel,
        out_shape=jax.ShapeDtypeStruct((N, H, W, C4), jnp.float32),
        grid=(N, T),
        in_specs=[x_spec, w_spec, vec_spec, vec_spec],
        out_specs=pl.BlockSpec((1, TH, W, C4), lambda n, t: (n, t, 0, 0)),
        scratch_shapes=[slab_scratch],
        compiler_params=cparams,
    )(x_win, wp, scale, shift)

    # ---- 2x2 interleave + NCHW: pure layout glue (single fused transpose) ----
    y = out.reshape(N, H, W, 2, 2, Cout)             # (n, i, j, a, b, c)
    y = jnp.transpose(y, (0, 5, 1, 3, 2, 4))         # (n, c, i, a, j, b)
    return y.reshape(N, Cout, 2 * H, 2 * W)


def reference(x_nchw, w1, w2, w3, w4, gamma, beta):
    """Pure-JAX reference mirroring the PyTorch forward (training-mode BN)."""
    def conv(x, w, pad_h, pad_w):
        return jax.lax.conv_general_dilated(
            x, w, window_strides=(1, 1), padding=(pad_h, pad_w),
            dimension_numbers=('NCHW', 'OIHW', 'NCHW'))

    o1 = conv(x_nchw, w1, (1, 1), (1, 1))
    o2 = conv(x_nchw, w2, (0, 1), (1, 1))
    o3 = conv(x_nchw, w3, (1, 1), (0, 1))
    o4 = conv(x_nchw, w4, (0, 1), (0, 1))

    def bn(y, g, b):
        mean = jnp.mean(y, axis=(0, 2, 3), keepdims=True)
        var = jnp.mean((y - mean) ** 2, axis=(0, 2, 3), keepdims=True)
        return ((y - mean) / jnp.sqrt(var + BN_EPS)
                * g.reshape(1, -1, 1, 1) + b.reshape(1, -1, 1, 1))

    o1, o2 = bn(o1, gamma[0], beta[0]), bn(o2, gamma[1], beta[1])
    o3, o4 = bn(o3, gamma[2], beta[2]), bn(o4, gamma[3], beta[3])

    def interleave(a, b, dim):
        m = list(a.shape)
        m[dim] *= 2
        return jnp.stack([a, b], axis=dim + 1).reshape(m)

    ac = interleave(o1, o2, 2)
    bd = interleave(o3, o4, 2)
    y = interleave(ac, bd, 3)
    return jnp.maximum(y, 0.0)


if __name__ == "__main__":
    N, Cin, Cout, H, W = 2, 4, 8, 16, 16

    key = jax.random.PRNGKey(0)
    kx, k1, k2, k3, k4, kg, kb = jax.random.split(key, 7)

    x = jax.random.normal(kx, (N, Cin, H, W), jnp.float32)
    # Conv weights in PyTorch OIHW layout, deterministic init (~kaiming scale).
    w1 = jax.random.normal(k1, (Cout, Cin, 3, 3), jnp.float32) / np.sqrt(Cin * 9)
    w2 = jax.random.normal(k2, (Cout, Cin, 2, 3), jnp.float32) / np.sqrt(Cin * 6)
    w3 = jax.random.normal(k3, (Cout, Cin, 3, 2), jnp.float32) / np.sqrt(Cin * 6)
    w4 = jax.random.normal(k4, (Cout, Cin, 2, 2), jnp.float32) / np.sqrt(Cin * 4)
    gamma = 1.0 + 0.2 * jax.random.normal(kg, (4, Cout), jnp.float32)
    beta = 0.1 * jax.random.normal(kb, (4, Cout), jnp.float32)

    # row_tile=8 -> grid (2, 2): exercises multi-tile stats reduction + megacore.
    y = fast_upconv_block(x, w1, w2, w3, w4, gamma, beta, row_tile=8)
    y = jax.block_until_ready(y)

    y_ref = jax.block_until_ready(reference(x, w1, w2, w3, w4, gamma, beta))

    assert y.shape == (N, Cout, 2 * H, 2 * W), y.shape
    np.testing.assert_allclose(np.asarray(y), np.asarray(y_ref),
                               rtol=5e-2, atol=5e-2)
    print("KERNEL_OK")
</pallas_src>

<mosaic_0001>
module attributes {stable_mosaic.version = 11 : i64} {
  func.func @_stats_kernel(%arg0: i32, %arg1: i32, %arg2: memref<1x10x18x4xbf16, #tpu.memory_space<vmem>>, %arg3: memref<36x32xbf16, #tpu.memory_space<vmem>>, %arg4: memref<1x1x2x32xf32, #tpu.memory_space<vmem>>, %arg5: memref<8x16x36xbf16, #tpu.memory_space<vmem>>) attributes {dimension_semantics = [#tpu.dimension_semantics<parallel>, #tpu.dimension_semantics<parallel>], iteration_bounds = array<i64: 2, 2>, scalar_prefetch = 0 : i64, scratch_operands = 1 : i64, tpu.core_type = #tpu.core_type<tc>, window_params = [{transform_indices = @transform_0, window_bounds = array<i64: 1, 10, 18, 4>}, {pipeline_mode = #tpu.pipeline_mode<synchronous>, transform_indices = @transform_1, window_bounds = array<i64: 36, 32>}, {transform_indices = @transform_2, window_bounds = array<i64: 1, 1, 2, 32>}]} {
    %c0 = arith.constant 0 : index
    %c0_0 = arith.constant 0 : index
    %c0_1 = arith.constant 0 : index
    %c0_2 = arith.constant 0 : index
    %0 = vector.load %arg2[%c0, %c0_0, %c0_1, %c0_2] : memref<1x10x18x4xbf16, #tpu.memory_space<vmem>>, vector<1x10x18x4xbf16>
    %1 = vector.shape_cast %0 : vector<1x10x18x4xbf16> to vector<10x18x4xbf16>
    %2 = vector.extract_strided_slice %1 {offsets = [0, 0, 0], sizes = [8, 16, 4], strides = [1, 1, 1]} : vector<10x18x4xbf16> to vector<8x16x4xbf16>
    %c0_3 = arith.constant 0 : index
    %c0_4 = arith.constant 0 : index
    %c0_5 = arith.constant 0 : index
    %3 = vector.load %arg5[%c0_3, %c0_4, %c0_5] : memref<8x16x36xbf16, #tpu.memory_space<vmem>>, vector<8x16x4xbf16>
    tpu.vector_store %arg5[%c0_3, %c0_4, %c0_5], %2 {strides = array<i32>} : memref<8x16x36xbf16, #tpu.memory_space<vmem>>, vector<8x16x4xbf16>,
    %4 = vector.extract_strided_slice %1 {offsets = [0, 1, 0], sizes = [8, 16, 4], strides = [1, 1, 1]} : vector<10x18x4xbf16> to vector<8x16x4xbf16>
    %c0_6 = arith.constant 0 : index
    %c0_7 = arith.constant 0 : index
    %c4 = arith.constant 4 : index
    %5 = vector.load %arg5[%c0_6, %c0_7, %c4] : memref<8x16x36xbf16, #tpu.memory_space<vmem>>, vector<8x16x4xbf16>
    tpu.vector_store %arg5[%c0_6, %c0_7, %c4], %4 {strides = array<i32>} : memref<8x16x36xbf16, #tpu.memory_space<vmem>>, vector<8x16x4xbf16>,
    %6 = vector.extract_strided_slice %1 {offsets = [0, 2, 0], sizes = [8, 16, 4], strides = [1, 1, 1]} : vector<10x18x4xbf16> to vector<8x16x4xbf16>
    %c0_8 = arith.constant 0 : index
    %c0_9 = arith.constant 0 : index
    %c8 = arith.constant 8 : index
    %7 = vector.load %arg5[%c0_8, %c0_9, %c8] : memref<8x16x36xbf16, #tpu.memory_space<vmem>>, vector<8x16x4xbf16>
    tpu.vector_store %arg5[%c0_8, %c0_9, %c8], %6 {strides = array<i32>} : memref<8x16x36xbf16, #tpu.memory_space<vmem>>, vector<8x16x4xbf16>,
    %8 = vector.extract_strided_slice %1 {offsets = [1, 0, 0], sizes = [8, 16, 4], strides = [1, 1, 1]} : vector<10x18x4xbf16> to vector<8x16x4xbf16>
    %c0_10 = arith.constant 0 : index
    %c0_11 = arith.constant 0 : index
    %c12 = arith.constant 12 : index
    %9 = vector.load %arg5[%c0_10, %c0_11, %c12] : memref<8x16x36xbf16, #tpu.memory_space<vmem>>, vector<8x16x4xbf16>
    tpu.vector_store %arg5[%c0_10, %c0_11, %c12], %8 {strides = array<i32>} : memref<8x16x36xbf16, #tpu.memory_space<vmem>>, vector<8x16x4xbf16>,
    %10 = vector.extract_strided_slice %1 {offsets = [1, 1, 0], sizes = [8, 16, 4], strides = [1, 1, 1]} : vector<10x18x4xbf16> to vector<8x16x4xbf16>
    %c0_12 = arith.constant 0 : index
    %c0_13 = arith.constant 0 : index
    %c16 = arith.constant 16 : index
    %11 = vector.load %arg5[%c0_12, %c0_13, %c16] : memref<8x16x36xbf16, #tpu.memory_space<vmem>>, vector<8x16x4xbf16>
    tpu.vector_store %arg5[%c0_12, %c0_13, %c16], %10 {strides = array<i32>} : memref<8x16x36xbf16, #tpu.memory_space<vmem>>, vector<8x16x4xbf16>,
    %12 = vector.extract_strided_slice %1 {offsets = [1, 2, 0], sizes = [8, 16, 4], strides = [1, 1, 1]} : vector<10x18x4xbf16> to vector<8x16x4xbf16>
    %c0_14 = arith.constant 0 : index
    %c0_15 = arith.constant 0 : index
    %c20 = arith.constant 20 : index
    %13 = vector.load %arg5[%c0_14, %c0_15, %c20] : memref<8x16x36xbf16, #tpu.memory_space<vmem>>, vector<8x16x4xbf16>
    tpu.vector_store %arg5[%c0_14, %c0_15, %c20], %12 {strides = array<i32>} : memref<8x16x36xbf16, #tpu.memory_space<vmem>>, vector<8x16x4xbf16>,
    %14 = vector.extract_strided_slice %1 {offsets = [2, 0, 0], sizes = [8, 16, 4], strides = [1, 1, 1]} : vector<10x18x4xbf16> to vector<8x16x4xbf16>
    %c0_16 = arith.constant 0 : index
    %c0_17 = arith.constant 0 : index
    %c24 = arith.constant 24 : index
    %15 = vector.load %arg5[%c0_16, %c0_17, %c24] : memref<8x16x36xbf16, #tpu.memory_space<vmem>>, vector<8x16x4xbf16>
    tpu.vector_store %arg5[%c0_16, %c0_17, %c24], %14 {strides = array<i32>} : memref<8x16x36xbf16, #tpu.memory_space<vmem>>, vector<8x16x4xbf16>,
    %16 = vector.extract_strided_slice %1 {offsets = [2, 1, 0], sizes = [8, 16, 4], strides = [1, 1, 1]} : vector<10x18x4xbf16> to vector<8x16x4xbf16>
    %c0_18 = arith.constant 0 : index
    %c0_19 = arith.constant 0 : index
    %c28 = arith.constant 28 : index
    %17 = vector.load %arg5[%c0_18, %c0_19, %c28] : memref<8x16x36xbf16, #tpu.memory_space<vmem>>, vector<8x16x4xbf16>
    tpu.vector_store %arg5[%c0_18, %c0_19, %c28], %16 {strides = array<i32>} : memref<8x16x36xbf16, #tpu.memory_space<vmem>>, vector<8x16x4xbf16>,
    %18 = vector.extract_strided_slice %1 {offsets = [2, 2, 0], sizes = [8, 16, 4], strides = [1, 1, 1]} : vector<10x18x4xbf16> to vector<8x16x4xbf16>
    %c0_20 = arith.constant 0 : index
    %c0_21 = arith.constant 0 : index
    %c32 = arith.constant 32 : index
    %19 = vector.load %arg5[%c0_20, %c0_21, %c32] : memref<8x16x36xbf16, #tpu.memory_space<vmem>>, vector<8x16x4xbf16>
    tpu.vector_store %arg5[%c0_20, %c0_21, %c32], %18 {strides = array<i32>} : memref<8x16x36xbf16, #tpu.memory_space<vmem>>, vector<8x16x4xbf16>,
    %c0_22 = arith.constant 0 : index
    %c0_23 = arith.constant 0 : index
    %c0_24 = arith.constant 0 : index
    %20 = vector.load %arg5[%c0_22, %c0_23, %c0_24] : memref<8x16x36xbf16, #tpu.memory_space<vmem>>, vector<8x16x36xbf16>
    %21 = vector.shape_cast %20 : vector<8x16x36xbf16> to vector<128x36xbf16>
    %c0_25 = arith.constant 0 : index
    %c0_26 = arith.constant 0 : index
    %22 = vector.load %arg3[%c0_25, %c0_26] : memref<36x32xbf16, #tpu.memory_space<vmem>>, vector<36x32xbf16>
    %cst = arith.constant dense<0.000000e+00> : vector<128x32xf32>
    %23 = tpu.matmul %21, %22, %cst {dimension_numbers = #tpu.dot_dimension_numbers<[1], [0], [0], [1], [0, 0, 1, 1], [], []>} : vector<128x36xbf16>, vector<36x32xbf16>, vector<128x32xf32> -> vector<128x32xf32>
    %cst_27 = arith.constant dense<0.000000e+00> : vector<32xf32>
    %24 = vector.multi_reduction <add>, %23, %cst_27 [0] : vector<128x32xf32> to vector<32xf32>
    %25 = vector.shape_cast %24 : vector<32xf32> to vector<1x32xf32>
    %26 = arith.mulf %23, %23 : vector<128x32xf32>
    %cst_28 = arith.constant dense<0.000000e+00> : vector<32xf32>
    %27 = vector.multi_reduction <add>, %26, %cst_28 [0] : vector<128x32xf32> to vector<32xf32>
    %28 = vector.shape_cast %27 : vector<32xf32> to vector<1x32xf32>
    %29 = tpu.concatenate %25, %28 in 0 : vector<1x32xf32>, vector<1x32xf32> -> vector<2x32xf32>
    %30 = vector.shape_cast %29 : vector<2x32xf32> to vector<1x1x2x32xf32>
    %c0_29 = arith.constant 0 : index
    %c0_30 = arith.constant 0 : index
    %c0_31 = arith.constant 0 : index
    %c0_32 = arith.constant 0 : index
    %31 = vector.load %arg4[%c0_29, %c0_30, %c0_31, %c0_32] : memref<1x1x2x32xf32, #tpu.memory_space<vmem>>, vector<1x1x2x32xf32>
    tpu.vector_store %arg4[%c0_29, %c0_30, %c0_31, %c0_32], %30 {strides = array<i32>} : memref<1x1x2x32xf32, #tpu.memory_space<vmem>>, vector<1x1x2x32xf32>,
    return
  }
  func.func @transform_0(%arg0: i32, %arg1: i32) -> (i32, i32, i32, i32) {
    %c2_i32 = arith.constant 2 : i32
    %0 = arith.muli %arg0, %c2_i32 : i32
    %1 = arith.addi %0, %arg1 : i32
    %c0_i32 = arith.constant 0 : i32
    %c0_i32_0 = arith.constant 0 : i32
    %c0_i32_1 = arith.constant 0 : i32
    %c0_i32_2 = arith.constant 0 : i32
    return %1, %c0_i32, %c0_i32_0, %c0_i32_1 : i32, i32, i32, i32
  }
  func.func @transform_1(%arg0: i32, %arg1: i32) -> (i32, i32) {
    %c0_i32 = arith.constant 0 : i32
    %c0_i32_0 = arith.constant 0 : i32
    %c0_i32_1 = arith.constant 0 : i32
    return %c0_i32, %c0_i32_0 : i32, i32
  }
  func.func @transform_2(%arg0: i32, %arg1: i32) -> (i32, i32, i32, i32) {
    %c0_i32 = arith.constant 0 : i32
    %c0_i32_0 = arith.constant 0 : i32
    %c0_i32_1 = arith.constant 0 : i32
    return %arg0, %arg1, %c0_i32, %c0_i32_0 : i32, i32, i32, i32
  }
}

</mosaic_0001>

<bundles_post_ra>
// kernel: tpu_custom_call.1
= control target key start
LH: loop header
LB: loop body
LE: loop exit
PB: predicated region body
PF: predicated region fallthrough
CT: control target
= control target key end

     0   :  { %7 = vsyncpa [#allocation4], 0  ;;  %s1844_s0 = inlined_call_operand.vmem [shape: bf16[4,10,18,4], index: 0, kind: input, shape index: {}]   ;;  %s1845_s1 = inlined_call_operand.vmem [shape: bf16[36,32], index: 1, kind: input, shape index: {}]   ;;  %s1846_s2 = inlined_call_operand.hbm [shape: f32[2,2,2,32], index: 2, kind: output, shape index: {}]  }
   0x1   :  { %9 = vsyncpa [#allocation4 + $0x1], 0  ;;  %s1361_s9 = smov 0   ;;  %s1363_s10 = smov 0  }
   0x2   :  { %s1365_s11 = smov 0   ;;  %s1367_s12 = smov 0  }
   0x3   :  { %s1369_s13 = smov 0   ;;  %s1371_s14 = smov 0  }
   0x4   :  { %s1373_s15 = smov 0   ;;  %s1375_s16 = smov 0  }
   0x5 LB: > { %s1051_s17 = sadd.s32 4294967295, %s1335_s16   ;;  %s1052_s18 = sadd.s32 4294967294, %s1335_s16   ;;  %s1335_s16 = sphi %s1375_s16, %s15_s16   ;;  %s1331_s15 = sphi %s1373_s15, %s1855_s15   ;;  %s1327_s14 = sphi %s1371_s14, %s1854_s14   ;;  %s1323_s13 = sphi %s1369_s13, %s1853_s13   ;;  %s1319_s12 = sphi %s1367_s12, %s1852_s12   ;;  %s1315_s11 = sphi %s1365_s11, %s1851_s11   ;;  %s1311_s10 = sphi %s1363_s10, %s1850_s10   ;;  %s1307_s9 = sphi %s1361_s9, %s1849_s9  }
   0x6   : > { %s24_s19 = sadd.s32 1, %s1327_s14  ;;  %s27_s20 = sadd.s32 1, %s1331_s15 }
   0x7   : > { %p25_p0 = scmp.ge.s32.totalorder %s24_s19, 2  ;;  %p97_p1 = scmp.ne.s32.totalorder %s1315_s11, %s1311_s10 }
   0x8   : > { %p98_p2 = scmp.eq.s32.totalorder %s1051_s17, 3  ;;  %p103_p5 = scmp.ne.s32.totalorder %s1311_s10, %s1307_s9 }
   0x9   : > { %s1857_s19 = smov (%p25_p0, %s24_s19), 0  ;;  %s1859_s20 = smov (!%p25_p0, %s27_s20), %s1331_s15 }
   0xa   : > { %s83_s21 = ssub.s32 %s1327_s14, %s1857_s19  ;;  %p1412_p3 = por %p98_p2, %p97_p1 }
   0xb   : > { %p29_p4 = scmp.ge.s32.totalorder %s1859_s20, 2  ;;  %p104_p6 = scmp.eq.s32.totalorder %s1052_s18, 3 }
   0xc   : > { %p1057_p7 = scmp.ge.s32.totalorder %s1335_s16, 1  ;;  %p137_p9 = scmp.lt.s32.totalorder %s1335_s16, 5 }
   0xd   : > { %s1861_s20 = smov (%p29_p4, %s1859_s20), 0  ;;  %p1421_p8 = por %p104_p6, %p103_p5 }
   0xe   : > { %s82_s24 = ssub.s32 %s1331_s15, %s1861_s20  ;;  %s87_s25 = sadd.s32 1, %s1315_s11 }
   0xf   : > { %s84_s26 = sor.u32 %s83_s21, %s82_s24  ;;  %p138_p10 = pnand %p1057_p7, %p137_p9 }
  0x10   : > { %p85_p11 = scmp.eq.s32.totalorder %s84_s26, 0  ;;  %s1059_s28 = sshll.u32 (!%p138_p10), %s1323_s13, 1  ;;  %vm412_vm0 = vcmask (!%p138_p10), 1046528   ;;  %vm282_vm1 = vsmask.f32 (!%p138_p10), 7424  ;;  %vm249_vm2 = vcmask (!%p138_p10), 31744  }
  0x11   : > { %141 = sbr.rel (%p138_p10) target bundleno = 530 (0x212), region = 28  ;;  %s1434_s29 = sadd.s32 (!%p138_p10), %s1319_s12, %s1059_s28  ;;  %vm767_vm3 = vcmask (!%p138_p10), 1041408   ;;  %vm403_vm4 = vcmask (!%p138_p10), 64544   ;;  %vm461_vm5 = vcmask (!%p138_p10), 97344   ;;  %vm499_vm6 = vcmask (!%p138_p10), 130144  }
  0x12   : > { %s1430_s27 = scalar_select %p85_p11, %s1315_s11, %s87_s25  }
  0x13   : > { %p163_p12 = scmp.lt.s32.totalorder (!%p138_p10), %s1434_s29, 3  ;;  %s1337_s7 = smov (!%p138_p10), 12   ;;  %vm547_vm7 = vcmask (!%p138_p10), 162944   ;;  %vm583_vm8 = vcmask (!%p138_p10), 195744   ;;  %vm621_vm9 = vcmask (!%p138_p10), 228544   ;;  %vm669_vm10 = vcmask (!%p138_p10), 261344  }
  0x14   : > { %s1338_s8 = smov (!%p138_p10), 20   ;;  %s1339_s12 = smov (!%p138_p10), 8   ;;  %vm705_vm11 = vcmask (!%p138_p10), 294144   ;;  %vm742_vm12 = vcmask (!%p138_p10), 293888   ;;  %vm868_vm13 = vcmask (!%p138_p10), 261120   ;;  %vm959_vm14 = vcmask (!%p138_p10), 1040384  }
  0x15   : > { %s1340_s13 = smov (!%p138_p10), 4   ;;  %s1341_s17 = smov (!%p138_p10), 16   ;;  %vm961_vm15 = vcmask (!%p138_p10), 254976  }
  0x16   : > { %s1342_s24 = smov (!%p138_p10), 24   ;;  %s1343_s28 = smov (!%p138_p10), 28  }
  0x17   : > { %s1344_s4 = smov (!%p138_p10), 32   ;;  %s158_s5 = sand.u32 (!%p138_p10), 1, %s1311_s10  }
  0x18   : > { %s164_s30 = scalar_select %p163_p12, %s1434_s29, 3 }
  0x19   : > { %s964_s21 = scalar_lea.sflag [#allocation4], %s158_s5 }
  0x1a   : > { %s1138_s3 = smul.u32 120, %s164_s30 }
  0x1c   : > { %s1441_s6 = scalar_lea.vmem %s1844_s0, %s1138_s3 }
  0x1d   : > { %v1444_v0 = vld [vmem:[%s1441_s6 + $0x18] sm:$0xff]   ;;  %v1219_v1 = vld [vmem:[%s1441_s6 + $0xc] sm:$0xff]   ;;  %v1220_v2 = vld [vmem:[%s1441_s6 + $0x14] ss:$0 sps:$4 sm:$0x11]  }
  0x1e   : > { %477 = vrot.lane.b32.xlu1 %v1444_v0, %s1337_s7  ;;  %v1221_v3 = vld [vmem:[%s1441_s6] sm:$0xff]   ;;  %252 = vst.msk [vmem:[#allocation2 + $0x10] sm:$0xff] %vm249_vm2, %v1444_v0  ;;  %475 = vrot.lane.b32.xlu0 %v1219_v1, %s1337_s7  ;;  %v416_v4 = vrot.slane %v1219_v1, 1  ;;  %251 = vst.msk [vmem:[#allocation2 + $0x8] sm:$0xff] %vm249_vm2, %v1219_v1  ;;  %v417_v5 = vrot.slane %v1220_v2, 1  ;;  %v296_v10 = vshrl.u32 %v1219_v1, 16 }
  0x1f   : > { %v1222_v6 = vld [vmem:[%s1441_s6 + $0x8] ss:$0 sps:$4 sm:$0x11]   ;;  %250 = vst.msk [vmem:[#allocation2] sm:$0xff] %vm249_vm2, %v1221_v3  ;;  %v413_v7 = vrot.slane %v1221_v3, 1  ;;  %v284_v8 = vshrl.u32 %v1221_v3, 16 }
  0x20   : > { %v286_v9 = vshll.u32 %v1221_v3, 16  ;;  %v418_v11 = vsel %vm412_vm0, %v416_v4, %v417_v5  ;;  %v414_v12 = vrot.slane %v1222_v6, 1  ;;  %v291_v13 = vshll.u32 %v1222_v6, 16  ;;  %v1223_v14 = vld [vmem:[%s1441_s6 + $0x20] ss:$0 sps:$4 sm:$0x11]  }
  0x21   : > { %v298_v15 = vshll.u32 %v1219_v1, 16  ;;  %v303_v17 = vshll.u32 %v1220_v2, 16  ;;  %v310_v18 = vshll.u32 %v1444_v0, 16  ;;  %v419_v21 = vrot.slane %v1444_v0, 1  ;;  %v1464_v23 = vld [vmem:[%s1441_s6 + $0x24] sm:$0xff]   ;;  %v1469_v28 = vld [vmem:[%s1441_s6 + $0x30] sm:$0xff]  }
  0x22   : > { %559 = vrot.lane.b32.xlu0 %v418_v11, %s1338_s8  ;;  %v288_v16 = vrot.slane %v286_v9, 1  ;;  %v415_v19 = vsel %vm412_vm0, %v413_v7, %v414_v12  ;;  %v293_v20 = vrot.slane %v291_v13, 1  ;;  %v420_v25 = vrot.slane %v1223_v14, 1  ;;  %v1472_v32 = vld [vmem:[%s1441_s6 + $0x2c] ss:$0 sps:$4 sm:$0x11]  }
  0x23   : > { %v300_v22 = vrot.slane %v298_v15, 1  ;;  %437 = vrot.lane.b32.xlu1 %v415_v19, %s1339_s12  ;;  %v305_v26 = vrot.slane %v303_v17, 1  ;;  %v308_v27 = vshrl.u32 %v1444_v0, 16  ;;  %v312_v30 = vrot.slane %v310_v18, 1  ;;  %v1475_v33 = vld [vmem:[%s1441_s6 + $0x3c] sm:$0xff]   ;;  %253 = vst.msk [vmem:[#allocation2 + $0x18] sm:$0xff] %vm249_vm2, %v1464_v23 }
  0x24   : > { %v289_v24 = vor.u32 %v288_v16, %v284_v8  ;;  %v315_v31 = vshll.u32 %v1223_v14, 16  ;;  %254 = vst.msk [vmem:[#allocation2 + $0x20] sm:$0xff] %vm249_vm2, %v1469_v28  ;;  %v322_v35 = vshll.u32 %v1464_v23, 16  ;;  %v1485_v36 = vld [vmem:[%s1441_s6 + $0x48] sm:$0xff]   ;;  %255 = vst.msk [vmem:[#allocation2 + $0x28] sm:$0xff] %vm249_vm2, %v1475_v33  ;;  %v1492_v38 = vsel %vm412_vm0, %v419_v21, %v420_v25  ;;  %v1512_v55 = vld [vmem:[%s1441_s6 + $0x54] sm:$0xff]  }
  0x25   : > { %v301_v29 = vor.u32 %v300_v22, %v296_v10  ;;  %v313_v39 = vor.u32 %v312_v30, %v308_v27  ;;  %256 = vst.msk [vmem:[#allocation2 + $0x30] sm:$0xff] %vm249_vm2, %v1485_v36  ;;  %v320_v41 = vshrl.u32 %v1464_v23, 16  ;;  %v327_v43 = vshll.u32 %v1472_v32, 16  ;;  %v1231_v47 = vld [vmem:[%s1441_s6 + $0x50] ss:$0 sps:$4 sm:$0x11]  }
  0x26   : > { %v294_v34 = vsel %vm282_vm1, %v289_v24, %v293_v20  ;;  %v317_v40 = vrot.slane %v315_v31, 1  ;;  %v324_v42 = vrot.slane %v322_v35, 1  ;;  %v422_v45 = vrot.slane %v1464_v23, 1  ;;  %v1233_v57 = vld [vmem:[%s1441_s6 + $0x5c] ss:$0 sps:$4 sm:$0x11]  }
  0x27   : > { %379 = vrot.lane.b32.xlu0 %v294_v34, %s1340_s13  ;;  %439 = vrot.lane.b32.xlu1 %v418_v11, %s1339_s12  ;;  %v306_v37 = vsel %vm282_vm1, %v301_v29, %v305_v26  ;;  %v423_v46 = vrot.slane %v1472_v32, 1  ;;  %v356_v48 = vshrl.u32 %v1485_v36, 16  ;;  %v358_v49 = vshll.u32 %v1485_v36, 16  ;;  %v1522_v61 = vld [vmem:[%s1441_s6 + $0x60] sm:$0xff]   ;;  %v1525_v62 = vld [vmem:[%s1441_s6 + $0x6c] sm:$0xff]   ;;  %257 = vst.msk [vmem:[#allocation2 + $0x38] sm:$0xff] %vm249_vm2, %v1512_v55 }
  0x28   : > { %v1502_v44 = vsel %vm282_vm1, %v313_v39, %v317_v40  ;;  %v431_v50 = vrot.slane %v1485_v36, 1  ;;  %v325_v51 = vor.u32 %v324_v42, %v320_v41  ;;  %v329_v52 = vrot.slane %v327_v43, 1  ;;  %v1238_v4 = vld [vmem:[%s1845_s1] sm:$0xff]   ;;  %v1235_v7 = vld [vmem:[%s1441_s6 + $0x68] ss:$0 sps:$4 sm:$0x11]  }
  0x29   : > { %v363_v53 = vshll.u32 %v1231_v47, 16  ;;  %v432_v54 = vrot.slane %v1231_v47, 1  ;;  %v360_v56 = vrot.slane %v358_v49, 1  ;;  %v368_v60 = vshrl.u32 %v1512_v55, 16  ;;  %1108 = vmatprep.subr.bf16.mxu0 %v1238_v4  ;;  %v1239_v13 = vld [vmem:[%s1845_s1 + $0x8] sm:$0xff]   ;;  %1130 = vmatprep.subr.bf16.mxu1 %v1238_v4 }
  0x2a   : > { %v370_v1 = vshll.u32 %v1512_v55, 16  ;;  %v375_v2 = vshll.u32 %v1233_v57, 16  ;;  %v434_v3 = vrot.slane %v1512_v55, 1  ;;  %v1537_v5 = vsel %vm282_vm1, %v325_v51, %v329_v52  ;;  %1109 = vmatpush3.bf16.msra.mxu0 %v1238_v4  ;;  %v1237_v19 = vld [vmem:[%s1441_s6 + $0x74] ss:$0 sps:$4 sm:$0x11]   ;;  %1133 = vmatpush3.bf16.msra.mxu1 %v1238_v4 }
  0x2b   : > { %381 = vrot.lane.b32.xlu0 %v306_v37, %s1340_s13  ;;  %561 = vrot.lane.b32.xlu1 %v1492_v38, %s1338_s8  ;;  %v365_v58 = vrot.slane %v363_v53, 1  ;;  %v1518_v59 = vsel %vm412_vm0, %v431_v50, %v432_v54  ;;  %v361_v63 = vor.u32 %v360_v56, %v356_v48  ;;  %v435_v6 = vrot.slane %v1233_v57, 1  ;;  %v1240_v31 = vld [vmem:[%s1845_s1 + $0x10] ss:$0 sps:$4 sm:$0x33]  }
  0x2c   : > { %v512_v8 = vshrl.u32 %v1522_v61, 16  ;;  %v514_v9 = vshll.u32 %v1522_v61, 16  ;;  %v372_v11 = vrot.slane %v370_v1, 1  ;;  %v377_v12 = vrot.slane %v375_v2, 1  ;;  %1110 = vmatprep.subr.bf16.mxu0 %v1239_v13  ;;  %1131 = vmatprep.subr.bf16.mxu1 %v1239_v13 }
  0x2d   : > { %v1545_v10 = vsel %vm282_vm1, %v361_v63, %v365_v58  ;;  %v1552_v14 = vsel %vm412_vm0, %v434_v3, %v435_v6  ;;  %v519_v16 = vshll.u32 %v1235_v7, 16  ;;  %v557_v17 = vrot.slane %v1235_v7, 1  ;;  %v1227_v43 = vld [vmem:[%s1441_s6 + $0x38] ss:$0 sps:$4 sm:$0x11]  }
  0x2e   : > { %v516_v15 = vrot.slane %v514_v9, 1  ;;  %v373_v18 = vor.u32 %v372_v11, %v368_v60  ;;  %v634_v20 = vshrl.u32 %v1525_v62, 16  ;;  %v636_v25 = vshll.u32 %v1525_v62, 16  ;;  %1111 = vmatpush3.bf16.msra.mxu0 %v1239_v13  ;;  %1134 = vmatpush3.bf16.msra.mxu1 %v1239_v13  ;;  %v1229_v53 = vld [vmem:[%s1441_s6 + $0x44] ss:$0 sps:$4 sm:$0x11]  }
  0x2f   : > { %523 = vrot.lane.b32.xlu0 %v306_v37, %s1341_s17  ;;  %525 = vrot.lane.b32.xlu1 %v1502_v44, %s1341_s17  ;;  %v521_v22 = vrot.slane %v519_v16, 1  ;;  %v641_v27 = vshll.u32 %v1237_v19, 16  ;;  %v678_v29 = vrot.slane %v1525_v62, 1  ;;  %v679_v30 = vrot.slane %v1237_v19, 1  ;;  %s1058_s6 = sshll.u32 %s158_s5, 1 }
  0x30   : > { %v517_v21 = vor.u32 %v516_v15, %v512_v8  ;;  %v1565_v26 = vsel %vm282_vm1, %v373_v18, %v377_v12  ;;  %v638_v35 = vrot.slane %v636_v25, 1  ;;  %v424_v41 = vsel %vm412_vm0, %v422_v45, %v423_v46  ;;  %1136 = vmatprep.subr.msk.bf16.mxu0 %vm767_vm3, %v1240_v31  ;;  %1137 = vmatprep.subr.msk.bf16.mxu1 %vm767_vm3, %v1240_v31 }
  0x31   : > { %v643_v37 = vrot.slane %v641_v27, 1  ;;  %v1575_v39 = vsel %vm412_vm0, %v678_v29, %v679_v30  ;;  %v769_v42 = vsel %vm767_vm3, %v1240_v31, 0  ;;  %v334_v47 = vshll.u32 %v1469_v28, 16 }
  0x32   : > { %v1572_v34 = vsel %vm282_vm1, %v517_v21, %v521_v22  ;;  %v639_v40 = vor.u32 %v638_v35, %v634_v20  ;;  %1113 = vmatpush3.bf16.msra.mxu0 %v769_v42  ;;  %1135 = vmatpush3.bf16.msra.mxu1 %v769_v42  ;;  %v332_v32 = vshrl.u32 %v1469_v28, 16  ;;  %v339_v45 = vshll.u32 %v1227_v43, 16 }
  0x33   : > { %597 = vrot.lane.b32.xlu0 %v1444_v0, %s1342_s24  ;;  %599 = vrot.lane.b32.xlu1 %v1464_v23, %s1342_s24  ;;  %v556_v0 = vrot.slane %v1522_v61, 1  ;;  %v425_v51 = vrot.slane %v1469_v28, 1  ;;  %v426_v52 = vrot.slane %v1227_v43, 1  ;;  %v346_v54 = vshll.u32 %v1475_v33, 16 }
  0x34   : > { %v1589_v48 = vsel %vm282_vm1, %v639_v40, %v643_v37  ;;  %v341_v49 = vrot.slane %v339_v45, 1  ;;  %v351_v57 = vshll.u32 %v1229_v53, 16  ;;  %v428_v1 = vrot.slane %v1475_v33, 1 }
  0x35   : > { %v1559_v24 = vsel %vm412_vm0, %v556_v0, %v557_v17  ;;  %v348_v56 = vrot.slane %v346_v54, 1  ;;  %v429_v2 = vrot.slane %v1229_v53, 1 }
  0x36   : > { %v353_v60 = vrot.slane %v351_v57, 1 }
  0x37   : > { %645 = vrot.lane.b32.xlu0 %v1502_v44, %s1343_s28  ;;  %647 = vrot.lane.b32.xlu1 %v1537_v5, %s1343_s28  ;;  %v430_v3 = vsel %vm412_vm0, %v428_v1, %v429_v2 }
  0x3b   : > { %681 = vrot.lane.b32.xlu0 %v1492_v38, %s1344_s4  ;;  %383 = vrot.lane.b32.xlu1 %v1502_v44, %s1340_s13  ;;  %v336_v44 = vrot.slane %v334_v47, 1 }
  0x3d   : > { %v337_v46 = vor.u32 %v336_v44, %v332_v32 }
  0x3f   : > { %683 = vrot.lane.b32.xlu0 %v424_v41, %s1344_s4  ;;  %385 = vrot.lane.b32.xlu1 %v1537_v5, %s1340_s13  ;;  %v342_v50 = vsel %vm282_vm1, %v337_v46, %v341_v49 }
  0x43   : > { %441 = vrot.lane.b32.xlu0 %v1492_v38, %s1339_s12  ;;  %443 = vrot.lane.b32.xlu1 %v424_v41, %s1339_s12  ;;  %v427_v38 = vsel %vm412_vm0, %v425_v51, %v426_v52 }
  0x47   : > { %479 = vrot.lane.b32.xlu0 %v1464_v23, %s1337_s7  ;;  %481 = vrot.lane.b32.xlu1 %v1469_v28, %s1337_s7  ;;  %v344_v23 = vshrl.u32 %v1475_v33, 16 }
  0x49   : > { %v349_v58 = vor.u32 %v348_v56, %v344_v23 }
  0x4b   : > { %527 = vrot.lane.b32.xlu0 %v1537_v5, %s1341_s17  ;;  %529 = vrot.lane.b32.xlu1 %v342_v50, %s1341_s17  ;;  %v354_v63 = vsel %vm282_vm1, %v349_v58, %v353_v60 }
  0x4f   : > { %563 = vrot.lane.b32.xlu0 %v424_v41, %s1338_s8  ;;  %565 = vrot.lane.b32.xlu1 %v427_v38, %s1338_s8 }
  0x53   : > { %601 = vrot.lane.b32.xlu0 %v1469_v28, %s1342_s24  ;;  %603 = vrot.lane.b32.xlu1 %v1475_v33, %s1342_s24 }
  0x57   : > { %649 = vrot.lane.b32.xlu0 %v342_v50, %s1343_s28  ;;  %651 = vrot.lane.b32.xlu1 %v354_v63, %s1343_s28 }
  0x5b   : > { %685 = vrot.lane.b32.xlu0 %v427_v38, %s1344_s4  ;;  %387 = vrot.lane.b32.xlu1 %v342_v50, %s1340_s13 }
  0x5f   : > { %687 = vrot.lane.b32.xlu0 %v430_v3, %s1344_s4  ;;  %389 = vrot.lane.b32.xlu1 %v354_v63, %s1340_s13 }
  0x63   : > { %445 = vrot.lane.b32.xlu0 %v427_v38, %s1339_s12  ;;  %447 = vrot.lane.b32.xlu1 %v430_v3, %s1339_s12 }
  0x67   : > { %483 = vrot.lane.b32.xlu0 %v1475_v33, %s1337_s7  ;;  %485 = vrot.lane.b32.xlu1 %v1485_v36, %s1337_s7 }
  0x6b   : > { %531 = vrot.lane.b32.xlu0 %v354_v63, %s1341_s17  ;;  %533 = vrot.lane.b32.xlu1 %v1545_v10, %s1341_s17 }
  0x6f   : > { %567 = vrot.lane.b32.xlu0 %v430_v3, %s1338_s8  ;;  %569 = vrot.lane.b32.xlu1 %v1518_v59, %s1338_s8 }
  0x73   : > { %605 = vrot.lane.b32.xlu0 %v1485_v36, %s1342_s24  ;;  %607 = vrot.lane.b32.xlu1 %v1512_v55, %s1342_s24 }
  0x77   : > { %653 = vrot.lane.b32.xlu0 %v1545_v10, %s1343_s28  ;;  %655 = vrot.lane.b32.xlu1 %v1565_v26, %s1343_s28 }
  0x7b   : > { %689 = vrot.lane.b32.xlu0 %v1518_v59, %s1344_s4  ;;  %391 = vrot.lane.b32.xlu1 %v1545_v10, %s1340_s13 }
  0x7f   : > { %691 = vrot.lane.b32.xlu0 %v1552_v14, %s1344_s4  ;;  %393 = vrot.lane.b32.xlu1 %v1565_v26, %s1340_s13 }
  0x83   : > { %449 = vrot.lane.b32.xlu0 %v1518_v59, %s1339_s12  ;;  %451 = vrot.lane.b32.xlu1 %v1552_v14, %s1339_s12 }
  0x87   : > { %487 = vrot.lane.b32.xlu0 %v1512_v55, %s1337_s7  ;;  %489 = vrot.lane.b32.xlu1 %v1522_v61, %s1337_s7  ;;  %s1094_s7 = sshll.u32 %s1434_s29, 5 }
  0x88   : > { %s1791_s18 = scalar_lea.hbm %s1846_s2, %s1094_s7 }
  0x8b   : > { %535 = vrot.lane.b32.xlu0 %v1565_v26, %s1341_s17  ;;  %537 = vrot.lane.b32.xlu1 %v1572_v34, %s1341_s17 }
  0x8f   : > { %571 = vrot.lane.b32.xlu0 %v1552_v14, %s1338_s8  ;;  %573 = vrot.lane.b32.xlu1 %v1559_v24, %s1338_s8  ;;  %s160_s8 = scalar_lea.vmem [#allocation3], %s1058_s6 }
  0x90   : > { %v478_v28 = vpop.permute.xlu1 %477  ;;  %v476_v33 = vpop.permute.xlu0 %475  ;;  %s979_s12 = sshll.u32 %s160_s8, 4  ;;  %s1793_s12 = int_to_ptr.vmem [resolvable:$true] %s979_s12 }
  0x91   : > { %s1241_s29 = scalar_lea.vmem %s1793_s12, 32 }
  0x92   : > { %p1242_p13 = scmp.ne.s32.totalorder %s1793_s12, %s1241_s29 }
  0x93   : > { %609 = vrot.lane.b32.xlu0 %v1522_v61, %s1342_s24  ;;  %611 = vrot.lane.b32.xlu1 %v1525_v62, %s1342_s24  ;;  %s1345_s24 = smov [#allocation3]  }
  0x94   : > { %v560_v36 = vpop.permute.xlu0 %559  ;;  %p1243_p0 = pnand %p1242_p13, %p1412_p3  ;;  %s1245_s25 = sshll.u32 %s1345_s24, 4  ;;  %s1246_s25 = int_to_ptr.vmem [resolvable:$false] %s1245_s25 }
  0x95   : > { %v438_v55 = vpop.permute.xlu1 %437  ;;  %s1247_s26 = scalar_lea.vmem %s1246_s25, 64  ;;  %p1248_p2 = scmp.lt.s32.totalorder %s1793_s12, %s1246_s25 }
  0x96   : > { %p1244_p1 = pneg %p1243_p0  ;;  %p1249_p4 = scmp.lt.s32.totalorder %s1247_s26, %s1241_s29 }
  0x97   : > { %657 = vrot.lane.b32.xlu0 %v1572_v34, %s1343_s28  ;;  %659 = vrot.lane.b32.xlu1 %v1589_v48, %s1343_s28 }
  0x98   : > { %p1250_p5 = por %p1249_p4, %p1248_p2 }
  0x99   : > { %v380_v59 = vpop.permute.xlu0 %379  ;;  %v440_v4 = vpop.permute.xlu1 %439 }
  0x9a   : > { %404 = vst.msk [vmem:[#allocation2] sm:$0xff] %vm403_vm4, %v380_v59  ;;  %p1251_p6 = pnand %p1250_p5, %p1244_p1 }
  0x9b   : > { %462 = vst.msk [vmem:[#allocation2] sm:$0xff] %vm461_vm5, %v438_v55  ;;  %693 = vrot.lane.b32.xlu0 %v1559_v24, %s1344_s4  ;;  %695 = vrot.lane.b32.xlu1 %v1575_v39, %s1344_s4 }
  0x9c   : > { %500 = vst.msk [vmem:[#allocation2] sm:$0xff] %vm499_vm6, %v476_v33 }
  0x9d   : > { %v382_v61 = vpop.permute.xlu0 %381  ;;  %v562_v62 = vpop.permute.xlu1 %561 }
  0x9e   : > { %405 = vst.msk [vmem:[#allocation2 + $0x8] sm:$0xff] %vm403_vm4, %v382_v61 }
  0x9f   : > { %463 = vst.msk [vmem:[#allocation2 + $0x8] sm:$0xff] %vm461_vm5, %v440_v4 }
  0xa0   : > { %501 = vst.msk [vmem:[#allocation2 + $0x8] sm:$0xff] %vm499_vm6, %v478_v28 }
  0xa1   : > { %v524_v5 = vpop.permute.xlu0 %523  ;;  %v526_v6 = vpop.permute.xlu1 %525 }
  0xa2   : > { %548 = vst.msk [vmem:[#allocation2] sm:$0xff] %vm547_vm7, %v524_v5  ;;  %549 = vst.msk [vmem:[#allocation2 + $0x8] sm:$0xff] %vm547_vm7, %v526_v6 }
  0xa3   : > { %584 = vst.msk [vmem:[#allocation2] sm:$0xff] %vm583_vm8, %v560_v36  ;;  %585 = vst.msk [vmem:[#allocation2 + $0x8] sm:$0xff] %vm583_vm8, %v562_v62 }
  0xa5   : > { %v598_v7 = vpop.permute.xlu0 %597  ;;  %v600_v8 = vpop.permute.xlu1 %599 }
  0xa6   : > { %622 = vst.msk [vmem:[#allocation2] sm:$0xff] %vm621_vm9, %v598_v7  ;;  %623 = vst.msk [vmem:[#allocation2 + $0x8] sm:$0xff] %vm621_vm9, %v600_v8 }
  0xa9   : > { %v646_v9 = vpop.permute.xlu0 %645  ;;  %v648_v10 = vpop.permute.xlu1 %647 }
  0xaa   : > { %670 = vst.msk [vmem:[#allocation2] sm:$0xff] %vm669_vm10, %v646_v9  ;;  %671 = vst.msk [vmem:[#allocation2 + $0x8] sm:$0xff] %vm669_vm10, %v648_v10 }
  0xad   : > { %v682_v11 = vpop.permute.xlu0 %681  ;;  %v384_v12 = vpop.permute.xlu1 %383 }
  0xae   : > { %706 = vst.msk [vmem:[#allocation2] sm:$0xff] %vm705_vm11, %v682_v11 }
  0xaf   : > { %406 = vst.msk [vmem:[#allocation2 + $0x10] sm:$0xff] %vm403_vm4, %v384_v12 }
  0xb1   : > { %v684_v0 = vpop.permute.xlu0 %683  ;;  %v386_v13 = vpop.permute.xlu1 %385 }
  0xb2   : > { %707 = vst.msk [vmem:[#allocation2 + $0x8] sm:$0xff] %vm705_vm11, %v684_v0 }
  0xb3   : > { %407 = vst.msk [vmem:[#allocation2 + $0x18] sm:$0xff] %vm403_vm4, %v386_v13 }
  0xb5   : > { %v442_v14 = vpop.permute.xlu0 %441  ;;  %v714_v15 = vld [vmem:[#allocation2] sm:$0xff]  ;;  %v444_v16 = vpop.permute.xlu1 %443 }
  0xb6   : > { %464 = vst.msk [vmem:[#allocation2 + $0x10] sm:$0xff] %vm461_vm5, %v442_v14  ;;  %1114 = vmatprep.mubr.msk.bf16.mxu0 %vm742_vm12, %v714_v15  ;;  %465 = vst.msk [vmem:[#allocation2 + $0x18] sm:$0xff] %vm461_vm5, %v444_v16 }
  0xb9   : > { %v480_v17 = vpop.permute.xlu0 %479  ;;  %v715_v18 = vld [vmem:[#allocation2 + $0x8] sm:$0xff]  ;;  %v482_v19 = vpop.permute.xlu1 %481 }
  0xba   : > { %502 = vst.msk [vmem:[#allocation2 + $0x10] sm:$0xff] %vm499_vm6, %v480_v17  ;;  %1115 = vmatmul.mubr.msk.bf16.vlgmr.msra.gmra.mrb[0].mxu0 %vm742_vm12, %v715_v18  ;;  %503 = vst.msk [vmem:[#allocation2 + $0x18] sm:$0xff] %vm499_vm6, %v482_v19 }
  0xbd   : > { %v528_v20 = vpop.permute.xlu0 %527  ;;  %v530_v21 = vpop.permute.xlu1 %529 }
  0xbe   : > { %550 = vst.msk [vmem:[#allocation2 + $0x10] sm:$0xff] %vm547_vm7, %v528_v20  ;;  %551 = vst.msk [vmem:[#allocation2 + $0x18] sm:$0xff] %vm547_vm7, %v530_v21 }
  0xc1   : > { %v564_v22 = vpop.permute.xlu0 %563  ;;  %v566_v24 = vpop.permute.xlu1 %565 }
  0xc2   : > { %586 = vst.msk [vmem:[#allocation2 + $0x10] sm:$0xff] %vm583_vm8, %v564_v22  ;;  %587 = vst.msk [vmem:[#allocation2 + $0x18] sm:$0xff] %vm583_vm8, %v566_v24 }
  0xc5   : > { %v602_v25 = vpop.permute.xlu0 %601  ;;  %v604_v26 = vpop.permute.xlu1 %603 }
  0xc6   : > { %624 = vst.msk [vmem:[#allocation2 + $0x10] sm:$0xff] %vm621_vm9, %v602_v25  ;;  %625 = vst.msk [vmem:[#allocation2 + $0x18] sm:$0xff] %vm621_vm9, %v604_v26 }
  0xc9   : > { %v650_v27 = vpop.permute.xlu0 %649  ;;  %v652_v29 = vpop.permute.xlu1 %651 }
  0xca   : > { %672 = vst.msk [vmem:[#allocation2 + $0x10] sm:$0xff] %vm669_vm10, %v650_v27  ;;  %673 = vst.msk [vmem:[#allocation2 + $0x18] sm:$0xff] %vm669_vm10, %v652_v29 }
  0xcd   : > { %v686_v30 = vpop.permute.xlu0 %685  ;;  %v388_v31 = vpop.permute.xlu1 %387 }
  0xce   : > { %708 = vst.msk [vmem:[#allocation2 + $0x10] sm:$0xff] %vm705_vm11, %v686_v30 }
  0xcf   : > { %408 = vst.msk [vmem:[#allocation2 + $0x20] sm:$0xff] %vm403_vm4, %v388_v31 }
  0xd1   : > { %v688_v34 = vpop.permute.xlu0 %687  ;;  %v390_v35 = vpop.permute.xlu1 %389 }
  0xd2   : > { %709 = vst.msk [vmem:[#allocation2 + $0x18] sm:$0xff] %vm705_vm11, %v688_v34 }
  0xd3   : > { %409 = vst.msk [vmem:[#allocation2 + $0x28] sm:$0xff] %vm403_vm4, %v390_v35 }
  0xd5   : > { %v446_v37 = vpop.permute.xlu0 %445  ;;  %v716_v39 = vld [vmem:[#allocation2 + $0x10] sm:$0xff]  ;;  %v448_v40 = vpop.permute.xlu1 %447 }
  0xd6   : > { %466 = vst.msk [vmem:[#allocation2 + $0x20] sm:$0xff] %vm461_vm5, %v446_v37  ;;  %1118 = vmatprep.mubr.msk.bf16.mxu0 %vm742_vm12, %v716_v39  ;;  %467 = vst.msk [vmem:[#allocation2 + $0x28] sm:$0xff] %vm461_vm5, %v448_v40 }
  0xd9   : > { %v484_v41 = vpop.permute.xlu0 %483  ;;  %v717_v42 = vld [vmem:[#allocation2 + $0x18] sm:$0xff]  ;;  %v486_v43 = vpop.permute.xlu1 %485 }
  0xda   : > { %504 = vst.msk [vmem:[#allocation2 + $0x20] sm:$0xff] %vm499_vm6, %v484_v41  ;;  %1119 = vmatmul.mubr.msk.bf16.gmra.mrb[4].mxu0 %vm742_vm12, %v717_v42  ;;  %505 = vst.msk [vmem:[#allocation2 + $0x28] sm:$0xff] %vm499_vm6, %v486_v43 }
  0xdd   : > { %v532_v47 = vpop.permute.xlu0 %531  ;;  %v534_v48 = vpop.permute.xlu1 %533 }
  0xde   : > { %552 = vst.msk [vmem:[#allocation2 + $0x20] sm:$0xff] %vm547_vm7, %v532_v47  ;;  %553 = vst.msk [vmem:[#allocation2 + $0x28] sm:$0xff] %vm547_vm7, %v534_v48 }
  0xe1   : > { %v568_v32 = vpop.permute.xlu0 %567  ;;  %v570_v44 = vpop.permute.xlu1 %569 }
  0xe2   : > { %588 = vst.msk [vmem:[#allocation2 + $0x20] sm:$0xff] %vm583_vm8, %v568_v32  ;;  %589 = vst.msk [vmem:[#allocation2 + $0x28] sm:$0xff] %vm583_vm8, %v570_v44 }
  0xe5   : > { %v606_v45 = vpop.permute.xlu0 %605  ;;  %v608_v46 = vpop.permute.xlu1 %607 }
  0xe6   : > { %626 = vst.msk [vmem:[#allocation2 + $0x20] sm:$0xff] %vm621_vm9, %v606_v45  ;;  %627 = vst.msk [vmem:[#allocation2 + $0x28] sm:$0xff] %vm621_vm9, %v608_v46 }
  0xe9   : > { %v654_v49 = vpop.permute.xlu0 %653  ;;  %v656_v50 = vpop.permute.xlu1 %655 }
  0xea   : > { %674 = vst.msk [vmem:[#allocation2 + $0x20] sm:$0xff] %vm669_vm10, %v654_v49  ;;  %675 = vst.msk [vmem:[#allocation2 + $0x28] sm:$0xff] %vm669_vm10, %v656_v50 }
  0xed   : > { %v690_v51 = vpop.permute.xlu0 %689  ;;  %v392_v52 = vpop.permute.xlu1 %391 }
  0xee   : > { %710 = vst.msk [vmem:[#allocation2 + $0x20] sm:$0xff] %vm705_vm11, %v690_v51 }
  0xef   : > { %410 = vst.msk [vmem:[#allocation2 + $0x30] sm:$0xff] %vm403_vm4, %v392_v52 }
  0xf1   : > { %v692_v53 = vpop.permute.xlu0 %691  ;;  %v394_v54 = vpop.permute.xlu1 %393 }
  0xf2   : > { %711 = vst.msk [vmem:[#allocation2 + $0x28] sm:$0xff] %vm705_vm11, %v692_v53 }
  0xf3   : > { %411 = vst.msk [vmem:[#allocation2 + $0x38] sm:$0xff] %vm403_vm4, %v394_v54 }
  0xf5   : > { %v450_v38 = vpop.permute.xlu0 %449  ;;  %v718_v23 = vld [vmem:[#allocation2 + $0x20] sm:$0xff]  ;;  %v452_v56 = vpop.permute.xlu1 %451 }
  0xf6   : > { %468 = vst.msk [vmem:[#allocation2 + $0x30] sm:$0xff] %vm461_vm5, %v450_v38  ;;  %1122 = vmatprep.mubr.msk.bf16.mxu1 %vm742_vm12, %v718_v23  ;;  %469 = vst.msk [vmem:[#allocation2 + $0x38] sm:$0xff] %vm461_vm5, %v452_v56 }
  0xf9   : > { %v488_v57 = vpop.permute.xlu0 %487  ;;  %v719_v58 = vld [vmem:[#allocation2 + $0x28] sm:$0xff]  ;;  %v490_v60 = vpop.permute.xlu1 %489 }
  0xfa   : > { %506 = vst.msk [vmem:[#allocation2 + $0x30] sm:$0xff] %vm499_vm6, %v488_v57  ;;  %1123 = vmatmul.mubr.msk.bf16.vlgmr.msra.gmra.mrb[0].mxu1 %vm742_vm12, %v719_v58  ;;  %507 = vst.msk [vmem:[#allocation2 + $0x38] sm:$0xff] %vm499_vm6, %v490_v60 }
  0xfd   : > { %v536_v63 = vpop.permute.xlu0 %535  ;;  %v538_v1 = vpop.permute.xlu1 %537 }
  0xfe   : > { %554 = vst.msk [vmem:[#allocation2 + $0x30] sm:$0xff] %vm547_vm7, %v536_v63  ;;  %555 = vst.msk [vmem:[#allocation2 + $0x38] sm:$0xff] %vm547_vm7, %v538_v1 }
 0x101   : > { %v572_v2 = vpop.permute.xlu0 %571  ;;  %v574_v3 = vpop.permute.xlu1 %573 }
 0x102   : > { %590 = vst.msk [vmem:[#allocation2 + $0x30] sm:$0xff] %vm583_vm8, %v572_v2  ;;  %591 = vst.msk [vmem:[#allocation2 + $0x38] sm:$0xff] %vm583_vm8, %v574_v3 }
 0x105   : > { %v610_v28 = vpop.permute.xlu0 %609  ;;  %v612_v33 = vpop.permute.xlu1 %611 }
 0x106   : > { %628 = vst.msk [vmem:[#allocation2 + $0x30] sm:$0xff] %vm621_vm9, %v610_v28  ;;  %629 = vst.msk [vmem:[#allocation2 + $0x38] sm:$0xff] %vm621_vm9, %v612_v33 }
 0x109   : > { %v658_v36 = vpop.permute.xlu0 %657  ;;  %v660_v55 = vpop.permute.xlu1 %659 }
 0x10a   : > { %676 = vst.msk [vmem:[#allocation2 + $0x30] sm:$0xff] %vm669_vm10, %v658_v36  ;;  %677 = vst.msk [vmem:[#allocation2 + $0x38] sm:$0xff] %vm669_vm10, %v660_v55 }
 0x10d   : > { %v694_v59 = vpop.permute.xlu0 %693  ;;  %v696_v4 = vpop.permute.xlu1 %695 }
 0x10e   : > { %712 = vst.msk [vmem:[#allocation2 + $0x30] sm:$0xff] %vm705_vm11, %v694_v59  ;;  %713 = vst.msk [vmem:[#allocation2 + $0x38] sm:$0xff] %vm705_vm11, %v696_v4 }
 0x115   : > { %v720_v61 = vld [vmem:[#allocation2 + $0x30] sm:$0xff]  ;;  %v721_v62 = vld [vmem:[#allocation2 + $0x38] sm:$0xff] }
 0x116   : > { %1126 = vmatprep.mubr.msk.bf16.mxu1 %vm742_vm12, %v720_v61 }
 0x117   : > { %1127 = vmatmul.mubr.msk.bf16.gmra.mrb[4].mxu1 %vm742_vm12, %v721_v62 }
 0x18d   : > { %v1116_v5 = vpop.f32.mrb[0].mxu0 }
 0x18e   : > { %v805_v6 = vpop.f32.mrb[1].mxu0  ;;  %v908_v10 = vmul.f32 %v1116_v5, %v1116_v5  ;;  %v872_v14 = vsel %vm868_vm13, %v1116_v5, 0.0 }
 0x18f   : > { %v906_v7 = vmul.f32 %v805_v6, %v805_v6  ;;  %v1117_v8 = vpop.f32.mrb[2].mxu0  ;;  %v869_v11 = vsel %vm868_vm13, %v805_v6, 0.0 }
 0x190   : > { %v808_v9 = vpop.f32.mrb[3].mxu0  ;;  %v909_v16 = vmul.f32 %v1117_v8, %v1117_v8  ;;  %v925_v20 = vsel %vm868_vm13, %v908_v10, 0.0  ;;  %v874_v21 = vsel %vm868_vm13, %v1117_v8, 0.0 }
 0x191   : > { %v870_v12 = vsel %vm868_vm13, %v808_v9, 0.0  ;;  %v907_v0 = vmul.f32 %v808_v9, %v808_v9  ;;  %v922_v15 = vsel %vm868_vm13, %v906_v7, 0.0 }
 0x192   : > { %v871_v13 = vadd.f32 %v870_v12, %v869_v11  ;;  %v927_v25 = vsel %vm868_vm13, %v909_v16, 0.0 }
 0x193   : > { %v923_v17 = vsel %vm868_vm13, %v907_v0, 0.0 }
 0x194   : > { %v873_v18 = vadd.f32 %v872_v14, %v871_v13  ;;  %v924_v19 = vadd.f32 %v923_v17, %v922_v15 }
 0x196   : > { %v926_v22 = vadd.f32 %v925_v20, %v924_v19  ;;  %v875_v24 = vadd.f32 %v874_v21, %v873_v18 }
 0x198   : > { %v928_v26 = vadd.f32 %v927_v25, %v926_v22 }
 0x1ad   : > { %v1120_v27 = vpop.f32.mrb[4].mxu0 }
 0x1ae   : > { %v821_v29 = vpop.f32.mrb[5].mxu0  ;;  %v912_v39 = vmul.f32 %v1120_v27, %v1120_v27  ;;  %v880_v48 = vsel %vm868_vm13, %v1120_v27, 0.0 }
 0x1af   : > { %v876_v30 = vsel %vm868_vm13, %v821_v29, 0.0  ;;  %v910_v31 = vmul.f32 %v821_v29, %v821_v29  ;;  %v1121_v34 = vpop.f32.mrb[6].mxu0 }
 0x1b0   : > { %v877_v35 = vadd.f32 %v876_v30, %v875_v24  ;;  %v824_v37 = vpop.f32.mrb[7].mxu0  ;;  %v913_v32 = vmul.f32 %v1121_v34, %v1121_v34  ;;  %v933_v49 = vsel %vm868_vm13, %v912_v39, 0.0  ;;  %v882_v50 = vsel %vm868_vm13, %v1121_v34, 0.0 }
 0x1b1   : > { %v929_v40 = vsel %vm868_vm13, %v910_v31, 0.0  ;;  %v878_v41 = vsel %vm868_vm13, %v824_v37, 0.0  ;;  %v911_v42 = vmul.f32 %v824_v37, %v824_v37 }
 0x1b2   : > { %v930_v43 = vadd.f32 %v929_v40, %v928_v26  ;;  %v879_v47 = vadd.f32 %v878_v41, %v877_v35  ;;  %v935_v53 = vsel %vm868_vm13, %v913_v32, 0.0 }
 0x1b3   : > { %v931_v44 = vsel %vm868_vm13, %v911_v42, 0.0 }
 0x1b4   : > { %v881_v45 = vadd.f32 %v880_v48, %v879_v47  ;;  %v932_v46 = vadd.f32 %v931_v44, %v930_v43 }
 0x1b6   : > { %v934_v51 = vadd.f32 %v933_v49, %v932_v46  ;;  %v883_v52 = vadd.f32 %v882_v50, %v881_v45 }
 0x1b8   : > { %v936_v54 = vadd.f32 %v935_v53, %v934_v51 }
 0x1cd   : > { %v1124_v38 = vpop.f32.mrb[0].mxu1 }
 0x1ce   : > { %v837_v23 = vpop.f32.mrb[1].mxu1  ;;  %v916_v1 = vmul.f32 %v1124_v38, %v1124_v38  ;;  %v888_v55 = vsel %vm868_vm13, %v1124_v38, 0.0 }
 0x1cf   : > { %v884_v56 = vsel %vm868_vm13, %v837_v23, 0.0  ;;  %v914_v57 = vmul.f32 %v837_v23, %v837_v23  ;;  %v1125_v58 = vpop.f32.mrb[2].mxu1 }
 0x1d0   : > { %v885_v60 = vadd.f32 %v884_v56, %v883_v52  ;;  %v840_v63 = vpop.f32.mrb[3].mxu1  ;;  %v917_v59 = vmul.f32 %v1125_v58, %v1125_v58  ;;  %v941_v5 = vsel %vm868_vm13, %v916_v1, 0.0  ;;  %v890_v6 = vsel %vm868_vm13, %v1125_v58, 0.0 }
 0x1d1   : > { %v937_v2 = vsel %vm868_vm13, %v914_v57, 0.0  ;;  %v886_v3 = vsel %vm868_vm13, %v840_v63, 0.0  ;;  %v915_v28 = vmul.f32 %v840_v63, %v840_v63 }
 0x1d2   : > { %v938_v33 = vadd.f32 %v937_v2, %v936_v54  ;;  %v887_v36 = vadd.f32 %v886_v3, %v885_v60  ;;  %v943_v9 = vsel %vm868_vm13, %v917_v59, 0.0 }
 0x1d3   : > { %v939_v4 = vsel %vm868_vm13, %v915_v28, 0.0 }
 0x1d4   : > { %v889_v61 = vadd.f32 %v888_v55, %v887_v36  ;;  %v940_v62 = vadd.f32 %v939_v4, %v938_v33 }
 0x1d6   : > { %v942_v7 = vadd.f32 %v941_v5, %v940_v62  ;;  %v891_v8 = vadd.f32 %v890_v6, %v889_v61 }
 0x1d8   : > { %v944_v10 = vadd.f32 %v943_v9, %v942_v7 }
 0x1ea   : > { %v1128_v11 = vpop.f32.mrb[4].mxu1 }
 0x1eb   : > { %v853_v12 = vpop.f32.mrb[5].mxu1  ;;  %v920_v17 = vmul.f32 %v1128_v11, %v1128_v11  ;;  %v896_v24 = vsel %vm868_vm13, %v1128_v11, 0.0 }
 0x1ec   : > { %v892_v0 = vsel %vm868_vm13, %v853_v12, 0.0  ;;  %v918_v13 = vmul.f32 %v853_v12, %v853_v12  ;;  %v1129_v14 = vpop.f32.mrb[6].mxu1 }
 0x1ed   : > { %v893_v15 = vadd.f32 %v892_v0, %v891_v8  ;;  %v856_v16 = vpop.f32.mrb[7].mxu1  ;;  %v921_v25 = vmul.f32 %v1129_v14, %v1129_v14  ;;  %v949_v30 = vsel %vm868_vm13, %v920_v17, 0.0  ;;  %v898_v31 = vsel %vm868_vm13, %v1129_v14, 0.0 }
 0x1ee   : > { %v945_v18 = vsel %vm868_vm13, %v918_v13, 0.0  ;;  %v894_v19 = vsel %vm868_vm13, %v856_v16, 0.0  ;;  %v919_v20 = vmul.f32 %v856_v16, %v856_v16 }
 0x1ef   : > { %v946_v21 = vadd.f32 %v945_v18, %v944_v10  ;;  %v895_v22 = vadd.f32 %v894_v19, %v893_v15  ;;  %v951_v37 = vsel %vm868_vm13, %v921_v25, 0.0 }
 0x1f0   : > { %v947_v26 = vsel %vm868_vm13, %v919_v20, 0.0 }
 0x1f1   : > { %v897_v27 = vadd.f32 %v896_v24, %v895_v22  ;;  %v948_v29 = vadd.f32 %v947_v26, %v946_v21 }
 0x1f3   : > { %v899_v34 = vadd.f32 %v898_v31, %v897_v27  ;;  %v950_v35 = vadd.f32 %v949_v30, %v948_v29 }
 0x1f5   : > { %v900_v39 = vrot.slane %v899_v34, 4  ;;  %v952_v40 = vadd.f32 %v951_v37, %v950_v35 }
 0x1f7   : > { %v901_v41 = vadd.f32 %v900_v39, %v899_v34  ;;  %v953_v42 = vrot.slane %v952_v40, 4 }
 0x1f9   : > { %v902_v43 = vrot.slane %v901_v41, 2  ;;  %v954_v47 = vadd.f32 %v953_v42, %v952_v40 }
 0x1fb   : > { %v903_v48 = vadd.f32 %v902_v43, %v901_v41  ;;  %v955_v32 = vrot.slane %v954_v47, 2 }
 0x1fd   : > { %v904_v44 = vrot.slane %v903_v48, 1  ;;  %v956_v45 = vadd.f32 %v955_v32, %v954_v47 }
 0x1ff   : > { %v957_v46 = vrot.slane %v956_v45, 1  ;;  %v905_v49 = vadd.f32 %v904_v44, %v903_v48 }
 0x201   : > { %v958_v50 = vadd.f32 %v957_v46, %v956_v45 }
 0x203   : > { %v960_v51 = vsel %vm959_vm14, %v905_v49, %v958_v50 }
 0x204   : > { %962 = vst.msk [vmem:[%s160_s8] sm:$0x3] %vm961_vm15, %v960_v51 }
 0x205   : > { %1254 = shalt.err (!%p1251_p6)
}
 0x206   : > { %s1255_s28 = scalar_lea.hbm %s1791_s18, 32  ;;  %s1259_s4 = scalar_lea.hbm %s1846_s2, 128 }
 0x207   : > { %p1256_p7 = scmp.ne.s32.totalorder %s1791_s18, %s1255_s28  ;;  %p1260_p11 = scmp.lt.u32.totalorder %s1791_s18, %s1846_s2 }
 0x208   : > { %p1261_p12 = scmp.lt.u32.totalorder %s1259_s4, %s1255_s28  ;;  %p1263_p0 = scmp.lt.u32.totalorder %s1255_s28, %s1791_s18 }
 0x209   : > { %p1257_p9 = pnand %p1256_p7, %p1412_p3 }
 0x20a   : > { %p1262_p13 = por %p1261_p12, %p1260_p11 }
 0x20b   : > { %p1258_p10 = pneg %p1257_p9 }
 0x20c   : > { %p1264_p1 = por %p1263_p0, %p1262_p13 }
 0x20e   : > { %p1265_p2 = pnand %p1264_p1, %p1258_p10 }
 0x210   : > { %1268 = shalt.err (!%p1265_p2)
}
 0x211   : > { %1139 = dma.vmem_to_hbm [thread:$0]  (%p1412_p3), %s1793_s12, 32, %s1791_s18, %s964_s21  }
 0x212 PF: > { %p1145_p4 = scmp.ge.s32.totalorder %s1335_s16, 2  ;;  %s991_s7 = sand.u32 1, %s1307_s9  }
 0x213   : > { %s992_s8 = scalar_lea.sflag [#allocation4], %s991_s7 }
 0x214   : > { %p1142_p5 = pnand %p1145_p4, %p1421_p8 }
 0x216   : > { %1302 = dma.done.wait (!%p1142_p5), %s992_s8, 32  }
 0x217   : > { %1304 = vsyncadd (!%p1142_p5), %s992_s8, 4294967264  ;;  %s15_s16 = sadd.s32 1, %s1335_s16   ;;  %s1849_s9 = smov %s1311_s10 }
 0x218   : > { %p12_p6 = scmp.ge.s32.totalorder %s15_s16, 6   ;;  %s1850_s10 = smov %s1315_s11 }
 0x219   : > { %s1851_s11 = smov %s1430_s27  ;;  %s1852_s12 = smov %s1327_s14 }
 0x21a   : > { %s1853_s13 = smov %s1331_s15  ;;  %s1854_s14 = smov %s1857_s19 }
 0x21b   : > { %s1855_s15 = smov %s1861_s20  ;;  %14 = sbr.rel (!%p12_p6) target bundleno = 5 (0x5), region = 63 }
 0x222   :  { %997 = vsyncpa [#allocation4], 1 }
 0x223   :  { %999 = vsyncpa [#allocation4 + $0x1], 1 }

</bundles_post_ra>
